<compile_context>
chip_gen: v5e
topology: v5e:2x2
jax: 0.10.0
libtpu: 0.0.40
codegen_flags: <defaults>
</compile_context>

<pallas_src>
import functools
import math

import jax
import jax.numpy as jnp
from jax.experimental import pallas as pl
from jax.experimental.pallas import tpu as pltpu

_LANE = 128
_MAX_SUB_TILE = 1024            # hard cap: 1024 sublanes x 128 lanes per step
_VMEM_BLOCK_BUDGET = 20 << 20   # double-buffered logits+targets blocks budget
_VMEM_LIMIT = 32 << 20          # explicit scoped-VMEM limit (safe on v5e/v6e/v7x)


def _focal_loss_kernel(target_ref, logits_ref, out_ref, *, gamma, alpha_vals,
                       num_classes, hw, block_elems, needs_tail_mask):
    # Block shapes:
    #   target_ref: (1, S, 128) int32
    #   logits_ref: (1, C, S, 128)
    #   out_ref   : (1, 1, 1, 128) f32   (lane-dense per-tile partial sums)
    tgt = target_ref[0]                                        # (S, 128)

    # --- pass 1: running max over the (small, unrolled) class axis ----------
    m = logits_ref[0, 0].astype(jnp.float32)
    for c in range(1, num_classes):
        m = jnp.maximum(m, logits_ref[0, c].astype(jnp.float32))

    # --- pass 2 (fused): sum-exp + one-hot gather of x_t, exp(x_t-m), alpha --
    sumexp = jnp.zeros_like(m)
    xt = jnp.zeros_like(m)
    et = jnp.zeros_like(m)
    at = jnp.zeros_like(m) if alpha_vals is not None else None
    for c in range(num_classes):
        xc = logits_ref[0, c].astype(jnp.float32)
        e = jnp.exp(xc - m)
        sumexp = sumexp + e
        sel = tgt == c
        xt = jnp.where(sel, xc, xt)
        et = jnp.where(sel, e, et)
        if alpha_vals is not None:
            at = jnp.where(sel, jnp.float32(alpha_vals[c]), at)

    # log p_t exactly; p_t via a near-free approx reciprocal (no second exp).
    logpt = xt - m - jnp.log(sumexp)
    pt = et * pl.reciprocal(sumexp, approx=True)
    if alpha_vals is not None:
        logpt = logpt * at

    g = float(gamma)
    if g == 0.0:
        loss = -logpt                                          # (1-pt)^0 == 1
    else:
        # Clamp: pt can round slightly above 1 (approx recip) -> keep base >= 0
        # so non-integer gamma never sees a negative pow base.
        omp = jnp.maximum(1.0 - pt, 0.0)
        if g.is_integer() and g > 0:
            mod = omp                                          # repeated multiply,
            for _ in range(int(g) - 1):                        # no pow / extra EUP
                mod = mod * omp
        else:
            mod = omp ** g
        loss = -(mod * logpt)                                  # (S, 128)

    # Zero contributions from:
    #  * out-of-range targets (garbage in boundary blocks / lane padding),
    #  * spatial positions beyond the true H*W (tail of the last block).
    valid = (tgt >= 0) & (tgt < num_classes)
    if needs_tail_mask:
        s = tgt.shape[0]
        row = jax.lax.broadcasted_iota(jnp.int32, (s, _LANE), 0)
        lane = jax.lax.broadcasted_iota(jnp.int32, (s, _LANE), 1)
        gpos = pl.program_id(1) * block_elems + row * _LANE + lane
        valid = valid & (gpos < hw)
    loss = jnp.where(valid, loss, 0.0)

    # Fold sublanes only (cheap); keep the 128-lane axis dense (unmasked vst).
    out_ref[...] = jnp.sum(loss, axis=0, keepdims=True).reshape(out_ref.shape)


def _choose_s_tile(s_total, num_classes, itemsize):
    """Largest sublane tile whose double-buffered blocks fit the VMEM budget."""
    # Sublane granularity for the logits dtype (f32: 8, bf16/f16: 16, 8-bit: 32).
    sub_align = 8 if itemsize >= 4 else (16 if itemsize == 2 else 32)
    # Per sublane row, double-buffered: logits (C * itemsize) + int32 targets.
    bytes_per_sublane = 2 * _LANE * (num_classes * itemsize + 4)
    cap = min(_MAX_SUB_TILE, _VMEM_BLOCK_BUDGET // bytes_per_sublane)
    cap = max(sub_align, (cap // sub_align) * sub_align)
    if s_total <= cap:
        return s_total              # single full-extent block (always layout-legal)
    return cap


def focal_loss(logits, target, *, gamma=0.0, alpha=None, size_average=True):
    """Pallas FocalLoss forward matching the PyTorch module semantics."""
    if logits.ndim > 2:
        n, c = int(logits.shape[0]), int(logits.shape[1])
        hw = int(math.prod(logits.shape[2:]))
        x = logits.reshape(n, c, hw)                 # free reshape, NCHW native
        t = target.reshape(n, hw).astype(jnp.int32)
    else:
        # (N, C) classification input: fold N onto the spatial / lane axis.
        n, hw, c = 1, int(logits.shape[0]), int(logits.shape[1])
        x = logits.T.reshape(1, c, hw)
        t = target.reshape(1, hw).astype(jnp.int32)

    # Minimal lane alignment only (multiple of 128); NO rounding to tile size.
    s_total = -(-hw // _LANE)
    hw128 = s_total * _LANE
    if hw128 != hw:
        x = jnp.pad(x, ((0, 0), (0, 0), (0, hw128 - hw)))
        t = jnp.pad(t, ((0, 0), (0, hw128 - hw)), constant_values=-1)
    x = x.reshape(n, c, s_total, _LANE)
    t = t.reshape(n, s_total, _LANE)

    itemsize = jnp.dtype(x.dtype).itemsize
    s_tile = _choose_s_tile(s_total, c, itemsize)
    num_t = -(-s_total // s_tile)
    needs_tail_mask = hw != num_t * s_tile * _LANE

    # Alpha baked as compile-time constants (scalar alpha -> [alpha, 1-alpha],
    # mirroring the PyTorch module).  Entries beyond the provided table are
    # zero-filled; PyTorch's gather would raise on such targets.
    if alpha is None:
        alpha_vals = None
    else:
        if isinstance(alpha, (float, int)) and not isinstance(alpha, bool):
            tab = [float(alpha), 1.0 - float(alpha)]
        else:
            tab = [float(v) for v in alpha]
        full = [0.0] * c
        for idx in range(min(c, len(tab))):
            full[idx] = tab[idx]
        alpha_vals = tuple(full)

    kernel = functools.partial(
        _focal_loss_kernel,
        gamma=float(gamma),
        alpha_vals=alpha_vals,
        num_classes=c,
        hw=hw,
        block_elems=s_tile * _LANE,
        needs_tail_mask=needs_tail_mask,
    )

    partials = pl.pallas_call(
        kernel,
        out_shape=jax.ShapeDtypeStruct((n, num_t, 1, _LANE), jnp.float32),
        grid_spec=pltpu.PrefetchScalarGridSpec(
            num_scalar_prefetch=0,
            grid=(n, num_t),
            in_specs=[
                pl.BlockSpec((1, s_tile, _LANE), lambda i, j: (i, j, 0)),
                pl.BlockSpec((1, c, s_tile, _LANE), lambda i, j: (i, 0, j, 0)),
            ],
            out_specs=pl.BlockSpec((1, 1, 1, _LANE),
                                   lambda i, j: (i, j, 0, 0)),
        ),
        compiler_params=pltpu.CompilerParams(
            dimension_semantics=("parallel", "parallel"),
            vmem_limit_bytes=_VMEM_LIMIT),
    )(t, x)

    total = jnp.sum(partials)             # tiny follow-up reduce in XLA
    if size_average:
        total = total / jnp.float32(n * hw)
    return total


def _focal_loss_ref(logits_nchw, target_nhw, *, gamma, alpha, size_average):
    n, c = logits_nchw.shape[0], logits_nchw.shape[1]
    x = jnp.transpose(logits_nchw.reshape(n, c, -1), (0, 2, 1)).reshape(-1, c)
    t = target_nhw.reshape(-1)
    logp = jax.nn.log_softmax(x, axis=-1)
    logpt = jnp.take_along_axis(logp, t[:, None], axis=1)[:, 0]
    pt = jnp.exp(logpt)
    if alpha is not None:
        a = jnp.asarray(alpha, dtype=jnp.float32)
        logpt = logpt * a[t]
    loss = -1.0 * (1.0 - pt) ** gamma * logpt
    return loss.mean() if size_average else loss.sum()


if __name__ == "__main__":
    key = jax.random.PRNGKey(0)
    k1, k2 = jax.random.split(key)

    N, C, H, W = 2, 4, 16, 16
    gamma = 2.0
    alpha = [0.25, 0.25, 0.25, 0.25]   # per-class weights (len == C)
    size_average = True

    logits = jax.random.normal(k1, (N, C, H, W), dtype=jnp.float32)
    target = jax.random.randint(k2, (N, H, W), 0, C, dtype=jnp.int32)

    loss = focal_loss(logits, target, gamma=gamma, alpha=alpha,
                      size_average=size_average)
    loss = jax.block_until_ready(loss)

    ref = _focal_loss_ref(logits, target, gamma=gamma, alpha=alpha,
                          size_average=size_average)
    # Tolerance covers the approx-reciprocal path for pt in the kernel.
    assert jnp.allclose(loss, ref, rtol=2e-3, atol=1e-6), (loss, ref)

    print("KERNEL_OK")
</pallas_src>

<mosaic_0001>
module attributes {stable_mosaic.version = 11 : i64} {
  func.func @_focal_loss_kernel(%arg0: i32, %arg1: i32, %arg2: memref<1x2x128xi32, #tpu.memory_space<vmem>>, %arg3: memref<1x4x2x128xf32, #tpu.memory_space<vmem>>, %arg4: memref<1x1x1x128xf32, #tpu.memory_space<vmem>>) attributes {dimension_semantics = [#tpu.dimension_semantics<parallel>, #tpu.dimension_semantics<parallel>], iteration_bounds = array<i64: 2, 1>, scalar_prefetch = 0 : i64, scratch_operands = 0 : i64, tpu.core_type = #tpu.core_type<tc>, window_params = [{transform_indices = @transform_0, window_bounds = array<i64: 1, 2, 128>}, {transform_indices = @transform_1, window_bounds = array<i64: 1, 4, 2, 128>}, {transform_indices = @transform_2, window_bounds = array<i64: 1, 1, 1, 128>}]} {
    %c0 = arith.constant 0 : index
    %c0_0 = arith.constant 0 : index
    %c0_1 = arith.constant 0 : index
    %0 = vector.load %arg2[%c0, %c0_0, %c0_1] : memref<1x2x128xi32, #tpu.memory_space<vmem>>, vector<1x2x128xi32>
    %1 = vector.shape_cast %0 : vector<1x2x128xi32> to vector<2x128xi32>
    %c0_2 = arith.constant 0 : index
    %c0_3 = arith.constant 0 : index
    %c0_4 = arith.constant 0 : index
    %c0_5 = arith.constant 0 : index
    %2 = vector.load %arg3[%c0_2, %c0_3, %c0_4, %c0_5] : memref<1x4x2x128xf32, #tpu.memory_space<vmem>>, vector<1x1x2x128xf32>
    %3 = vector.shape_cast %2 : vector<1x1x2x128xf32> to vector<2x128xf32>
    %c0_6 = arith.constant 0 : index
    %c1 = arith.constant 1 : index
    %c0_7 = arith.constant 0 : index
    %c0_8 = arith.constant 0 : index
    %4 = vector.load %arg3[%c0_6, %c1, %c0_7, %c0_8] : memref<1x4x2x128xf32, #tpu.memory_space<vmem>>, vector<1x1x2x128xf32>
    %5 = vector.shape_cast %4 : vector<1x1x2x128xf32> to vector<2x128xf32>
    %6 = arith.maximumf %3, %5 : vector<2x128xf32>
    %c0_9 = arith.constant 0 : index
    %c2 = arith.constant 2 : index
    %c0_10 = arith.constant 0 : index
    %c0_11 = arith.constant 0 : index
    %7 = vector.load %arg3[%c0_9, %c2, %c0_10, %c0_11] : memref<1x4x2x128xf32, #tpu.memory_space<vmem>>, vector<1x1x2x128xf32>
    %8 = vector.shape_cast %7 : vector<1x1x2x128xf32> to vector<2x128xf32>
    %9 = arith.maximumf %6, %8 : vector<2x128xf32>
    %c0_12 = arith.constant 0 : index
    %c3 = arith.constant 3 : index
    %c0_13 = arith.constant 0 : index
    %c0_14 = arith.constant 0 : index
    %10 = vector.load %arg3[%c0_12, %c3, %c0_13, %c0_14] : memref<1x4x2x128xf32, #tpu.memory_space<vmem>>, vector<1x1x2x128xf32>
    %11 = vector.shape_cast %10 : vector<1x1x2x128xf32> to vector<2x128xf32>
    %12 = arith.maximumf %9, %11 : vector<2x128xf32>
    %cst = arith.constant 0.000000e+00 : f32
    %13 = vector.broadcast %cst : f32 to vector<2x128xf32>
    %cst_15 = arith.constant 0.000000e+00 : f32
    %14 = vector.broadcast %cst_15 : f32 to vector<2x128xf32>
    %cst_16 = arith.constant 0.000000e+00 : f32
    %15 = vector.broadcast %cst_16 : f32 to vector<2x128xf32>
    %cst_17 = arith.constant 0.000000e+00 : f32
    %16 = vector.broadcast %cst_17 : f32 to vector<2x128xf32>
    %c0_18 = arith.constant 0 : index
    %c0_19 = arith.constant 0 : index
    %c0_20 = arith.constant 0 : index
    %c0_21 = arith.constant 0 : index
    %17 = vector.load %arg3[%c0_18, %c0_19, %c0_20, %c0_21] : memref<1x4x2x128xf32, #tpu.memory_space<vmem>>, vector<1x1x2x128xf32>
    %18 = vector.shape_cast %17 : vector<1x1x2x128xf32> to vector<2x128xf32>
    %19 = arith.subf %18, %12 : vector<2x128xf32>
    %20 = math.exp %19 : vector<2x128xf32>
    %21 = arith.addf %13, %20 : vector<2x128xf32>
    %c0_i32 = arith.constant 0 : i32
    %22 = vector.broadcast %c0_i32 : i32 to vector<2x128xi32>
    %23 = arith.cmpi eq, %1, %22 : vector<2x128xi32>
    %24 = arith.select %23, %18, %14 : vector<2x128xi1>, vector<2x128xf32>
    %25 = arith.select %23, %20, %15 : vector<2x128xi1>, vector<2x128xf32>
    %cst_22 = arith.constant 2.500000e-01 : f32
    %26 = vector.broadcast %cst_22 : f32 to vector<2x128xf32>
    %27 = arith.select %23, %26, %16 : vector<2x128xi1>, vector<2x128xf32>
    %c0_23 = arith.constant 0 : index
    %c1_24 = arith.constant 1 : index
    %c0_25 = arith.constant 0 : index
    %c0_26 = arith.constant 0 : index
    %28 = vector.load %arg3[%c0_23, %c1_24, %c0_25, %c0_26] : memref<1x4x2x128xf32, #tpu.memory_space<vmem>>, vector<1x1x2x128xf32>
    %29 = vector.shape_cast %28 : vector<1x1x2x128xf32> to vector<2x128xf32>
    %30 = arith.subf %29, %12 : vector<2x128xf32>
    %31 = math.exp %30 : vector<2x128xf32>
    %32 = arith.addf %21, %31 : vector<2x128xf32>
    %c1_i32 = arith.constant 1 : i32
    %33 = vector.broadcast %c1_i32 : i32 to vector<2x128xi32>
    %34 = arith.cmpi eq, %1, %33 : vector<2x128xi32>
    %35 = arith.select %34, %29, %24 : vector<2x128xi1>, vector<2x128xf32>
    %36 = arith.select %34, %31, %25 : vector<2x128xi1>, vector<2x128xf32>
    %cst_27 = arith.constant 2.500000e-01 : f32
    %37 = vector.broadcast %cst_27 : f32 to vector<2x128xf32>
    %38 = arith.select %34, %37, %27 : vector<2x128xi1>, vector<2x128xf32>
    %c0_28 = arith.constant 0 : index
    %c2_29 = arith.constant 2 : index
    %c0_30 = arith.constant 0 : index
    %c0_31 = arith.constant 0 : index
    %39 = vector.load %arg3[%c0_28, %c2_29, %c0_30, %c0_31] : memref<1x4x2x128xf32, #tpu.memory_space<vmem>>, vector<1x1x2x128xf32>
    %40 = vector.shape_cast %39 : vector<1x1x2x128xf32> to vector<2x128xf32>
    %41 = arith.subf %40, %12 : vector<2x128xf32>
    %42 = math.exp %41 : vector<2x128xf32>
    %43 = arith.addf %32, %42 : vector<2x128xf32>
    %c2_i32 = arith.constant 2 : i32
    %44 = vector.broadcast %c2_i32 : i32 to vector<2x128xi32>
    %45 = arith.cmpi eq, %1, %44 : vector<2x128xi32>
    %46 = arith.select %45, %40, %35 : vector<2x128xi1>, vector<2x128xf32>
    %47 = arith.select %45, %42, %36 : vector<2x128xi1>, vector<2x128xf32>
    %cst_32 = arith.constant 2.500000e-01 : f32
    %48 = vector.broadcast %cst_32 : f32 to vector<2x128xf32>
    %49 = arith.select %45, %48, %38 : vector<2x128xi1>, vector<2x128xf32>
    %c0_33 = arith.constant 0 : index
    %c3_34 = arith.constant 3 : index
    %c0_35 = arith.constant 0 : index
    %c0_36 = arith.constant 0 : index
    %50 = vector.load %arg3[%c0_33, %c3_34, %c0_35, %c0_36] : memref<1x4x2x128xf32, #tpu.memory_space<vmem>>, vector<1x1x2x128xf32>
    %51 = vector.shape_cast %50 : vector<1x1x2x128xf32> to vector<2x128xf32>
    %52 = arith.subf %51, %12 : vector<2x128xf32>
    %53 = math.exp %52 : vector<2x128xf32>
    %54 = arith.addf %43, %53 : vector<2x128xf32>
    %c3_i32 = arith.constant 3 : i32
    %55 = vector.broadcast %c3_i32 : i32 to vector<2x128xi32>
    %56 = arith.cmpi eq, %1, %55 : vector<2x128xi32>
    %57 = arith.select %56, %51, %46 : vector<2x128xi1>, vector<2x128xf32>
    %58 = arith.select %56, %53, %47 : vector<2x128xi1>, vector<2x128xf32>
    %cst_37 = arith.constant 2.500000e-01 : f32
    %59 = vector.broadcast %cst_37 : f32 to vector<2x128xf32>
    %60 = arith.select %56, %59, %49 : vector<2x128xi1>, vector<2x128xf32>
    %61 = arith.subf %57, %12 : vector<2x128xf32>
    %62 = math.log %54 : vector<2x128xf32>
    %63 = arith.subf %61, %62 : vector<2x128xf32>
    %64 = tpu.reciprocal %54 {approx = true} : vector<2x128xf32> -> vector<2x128xf32>
    %65 = arith.mulf %58, %64 : vector<2x128xf32>
    %66 = arith.mulf %63, %60 : vector<2x128xf32>
    %cst_38 = arith.constant 1.000000e+00 : f32
    %67 = vector.broadcast %cst_38 : f32 to vector<2x128xf32>
    %68 = arith.subf %67, %65 : vector<2x128xf32>
    %cst_39 = arith.constant 0.000000e+00 : f32
    %69 = vector.broadcast %cst_39 : f32 to vector<2x128xf32>
    %70 = arith.maximumf %68, %69 : vector<2x128xf32>
    %71 = arith.mulf %70, %70 : vector<2x128xf32>
    %72 = arith.mulf %71, %66 : vector<2x128xf32>
    %cst_40 = arith.constant 0.000000e+00 : f32
    %73 = vector.broadcast %cst_40 : f32 to vector<2x128xf32>
    %74 = arith.subf %73, %72 : vector<2x128xf32>
    %c0_i32_41 = arith.constant 0 : i32
    %75 = vector.broadcast %c0_i32_41 : i32 to vector<2x128xi32>
    %76 = arith.cmpi sge, %1, %75 : vector<2x128xi32>
    %c4_i32 = arith.constant 4 : i32
    %77 = vector.broadcast %c4_i32 : i32 to vector<2x128xi32>
    %78 = arith.cmpi slt, %1, %77 : vector<2x128xi32>
    %79 = arith.andi %76, %78 : vector<2x128xi1>
    %cst_42 = arith.constant 0.000000e+00 : f32
    %80 = vector.broadcast %cst_42 : f32 to vector<2x128xf32>
    %81 = arith.select %79, %74, %80 : vector<2x128xi1>, vector<2x128xf32>
    %cst_43 = arith.constant dense<0.000000e+00> : vector<128xf32>
    %82 = vector.multi_reduction <add>, %81, %cst_43 [0] : vector<2x128xf32> to vector<128xf32>
    %83 = vector.shape_cast %82 : vector<128xf32> to vector<1x128xf32>
    %84 = vector.shape_cast %83 : vector<1x128xf32> to vector<1x1x1x128xf32>
    %c0_44 = arith.constant 0 : index
    %c0_45 = arith.constant 0 : index
    %c0_46 = arith.constant 0 : index
    %c0_47 = arith.constant 0 : index
    %85 = vector.load %arg4[%c0_44, %c0_45, %c0_46, %c0_47] : memref<1x1x1x128xf32, #tpu.memory_space<vmem>>, vector<1x1x1x128xf32>
    tpu.vector_store %arg4[%c0_44, %c0_45, %c0_46, %c0_47], %84 {strides = array<i32>} : memref<1x1x1x128xf32, #tpu.memory_space<vmem>>, vector<1x1x1x128xf32>,
    return
  }
  func.func @transform_0(%arg0: i32, %arg1: i32) -> (i32, i32, i32) {
    %c0_i32 = arith.constant 0 : i32
    %c0_i32_0 = arith.constant 0 : i32
    return %arg0, %arg1, %c0_i32 : i32, i32, i32
  }
  func.func @transform_1(%arg0: i32, %arg1: i32) -> (i32, i32, i32, i32) {
    %c0_i32 = arith.constant 0 : i32
    %c0_i32_0 = arith.constant 0 : i32
    %c0_i32_1 = arith.constant 0 : i32
    return %arg0, %c0_i32, %arg1, %c0_i32_0 : i32, i32, i32, i32
  }
  func.func @transform_2(%arg0: i32, %arg1: i32) -> (i32, i32, i32, i32) {
    %c0_i32 = arith.constant 0 : i32
    %c0_i32_0 = arith.constant 0 : i32
    %c0_i32_1 = arith.constant 0 : i32
    return %arg0, %arg1, %c0_i32, %c0_i32_0 : i32, i32, i32, i32
  }
}

</mosaic_0001>

<bundles_post_ra>
// kernel: tpu_custom_call.1
= control target key start
LH: loop header
LB: loop body
LE: loop exit
PB: predicated region body
PF: predicated region fallthrough
CT: control target
= control target key end

     0   :  { %7 = vsyncpa [#allocation3], 0  ;;  %s816_s0 = inlined_call_operand.hbm [shape: s32[2,2,128], index: 0, kind: input, shape index: {}]   ;;  %s817_s1 = inlined_call_operand.hbm [shape: f32[2,4,2,128], index: 1, kind: input, shape index: {}]   ;;  %s818_s2 = inlined_call_operand.hbm [shape: f32[2,1,1,128], index: 2, kind: output, shape index: {}]  }
   0x1   :  { %9 = vsyncpa [#allocation3 + $0x1], 0 }
   0x2   :  { %10 = vsyncpa [#allocation6], 0 }
   0x3   :  { %12 = vsyncpa [#allocation6 + $0x1], 0 }
   0x4   :  { %13 = vsyncpa [#allocation4], 0 }
   0x5   :  { %15 = vsyncpa [#allocation4 + $0x1], 0  ;;  %s671_s9 = smov 0   ;;  %s673_s10 = smov 0  }
   0x6   :  { %s675_s11 = smov 0   ;;  %s677_s12 = smov 0  }
   0x7   :  { %s679_s13 = smov 0   ;;  %s681_s14 = smov 0  }
   0x8 LB: > { %s405_s15 = sadd.s32 4294967295, %s651_s14   ;;  %s406_s16 = sadd.s32 4294967294, %s651_s14   ;;  %s651_s14 = sphi %s681_s14, %s21_s14   ;;  %s647_s13 = sphi %s679_s13, %s828_s13   ;;  %s643_s12 = sphi %s677_s12, %s827_s12   ;;  %s639_s11 = sphi %s675_s11, %s826_s11   ;;  %s635_s10 = sphi %s673_s10, %s825_s10   ;;  %s631_s9 = sphi %s671_s9, %s824_s9  }
   0x9   : > { %s33_s17 = sadd.s32 1, %s647_s13  ;;  %s42_s18 = sadd.s32 1, %s639_s11 }
   0xa   : > { %p35_p0 = scmp.ge.s32.totalorder %s33_s17, 2  ;;  %p49_p1 = scmp.ne.s32.totalorder %s639_s11, %s635_s10 }
   0xb   : > { %p50_p2 = scmp.eq.s32.totalorder %s651_s14, 0  ;;  %p55_p3 = scmp.ne.s32.totalorder %s635_s10, %s631_s9 }
   0xc   : > { %s830_s17 = smov (%p35_p0, %s33_s17), 0  ;;  %p56_p5 = scmp.eq.s32.totalorder %s405_s15, 0 }
   0xd   : > { %p712_p4 = por %p50_p2, %p49_p1  ;;  %s37_s20 = ssub.s32 %s647_s13, %s830_s17 }
   0xe   : > { %p109_p6 = scmp.eq.s32.totalorder %s405_s15, 1  ;;  %p40_p7 = scmp.eq.s32.totalorder %s37_s20, 0 }
   0xf   : > { %p718_p8 = por %p56_p5, %p55_p3  ;;  %p115_p10 = scmp.eq.s32.totalorder %s406_s16, 1 }
  0x10   : > { %p722_p9 = por %p109_p6, %p49_p1  ;;  %p408_p12 = scmp.ge.s32.totalorder %s651_s14, 2 }
  0x11   : > { %s727_s23 = scalar_select %p40_p7, %s639_s11, %s42_s18  }
  0x12   : > { %p729_p11 = por %p115_p10, %p55_p3  ;;  %p440_p13 = scmp.lt.s32.totalorder %s651_s14, 2 }
  0x13   : > { %s736_s25 = sand.u32 1, %s639_s11   ;;  %s410_s27 = sshll.u32 %s647_s13, 1 }
  0x14   : > { %s409_s26 = sshll.u32 %s736_s25, 1  ;;  %s144_s30 = scalar_lea.hbm %s816_s0, %s410_s27 }
  0x15   : > { %s139_s3 = scalar_lea.vmem [#allocation2], %s409_s26  ;;  %s146_s5 = sshll.u32 %s144_s30, 4  ;;  %s147_s5 = int_to_ptr.hbm [resolvable:$true] %s146_s5 }
  0x16   : > { %s148_s4 = sshll.u32 %s139_s3, 4  ;;  %p745_p0 = pnand %p440_p13, %p712_p4  ;;  %s149_s4 = int_to_ptr.vmem [resolvable:$true] %s148_s4 }
  0x17   : > { %p414_p1 = scmp.ge.s32.totalorder %s651_s14, 1  ;;  %p176_p2 = scmp.lt.s32.totalorder %s651_s14, 3 }
  0x18   : > { %s136_s7 = scalar_lea.sflag [#allocation3], %s736_s25  ;;  %s411_s8 = sshll.u32 %s736_s25, 3 }
  0x19   : > { %432 = dma.hbm_to_vmem [thread:$0]  (!%p745_p0), %s147_s5, 32, %s149_s4, %s136_s7  }
  0x1a   : > { %p177_p3 = pnand %p414_p1, %p176_p2  ;;  %s422_s15 = sshll.u32 %s647_s13, 3 }
  0x1b   : > { %s165_s20 = scalar_lea.hbm %s817_s1, %s422_s15  ;;  %s159_s26 = scalar_lea.vmem [#allocation5], %s411_s8 }
  0x1c   : > { %s168_s19 = sshll.u32 %s159_s26, 4  ;;  %s166_s27 = sshll.u32 %s165_s20, 4  ;;  %s169_s19 = int_to_ptr.vmem [resolvable:$true] %s168_s19  ;;  %s167_s27 = int_to_ptr.hbm [resolvable:$true] %s166_s27 }
  0x1d   : > { %s156_s28 = scalar_lea.sflag [#allocation6], %s736_s25  ;;  %s653_s29 = smov 32  }
  0x1e   : > { %s654_s30 = smov 2   ;;  %180 = sbr.rel (%p177_p3) target bundleno = 101 (0x65), region = 28 }
  0x1f   : > { %435 = dma.hbm_to_vmem [thread:$0]  (!%p745_p0), %s167_s27, 128, %s169_s19, %s156_s28, %s653_s29, %s653_s29, %s654_s30  }
  0x20   : > { %s763_s3 = sand.u32 (!%p177_p3), 1, %s635_s10  }
  0x21   : > { %s415_s4 = sshll.u32 (!%p177_p3), %s763_s3, 1  ;;  %s183_s5 = scalar_lea.sflag (!%p177_p3), [#allocation3], %s763_s3 }
  0x22   : > { %s186_s7 = scalar_lea.vmem (!%p177_p3), [#allocation2], %s415_s4 }
  0x23   : > { %618 = dma.done.wait (%p718_p8), %s183_s5, 32  }
  0x24   : > { %620 = vsyncadd (%p718_p8), %s183_s5, 4294967264  ;;  %s416_s25 = sshll.u32 %s763_s3, 3  ;;  %s193_s6 = scalar_lea.sflag [#allocation6], %s763_s3 }
  0x25   : > { %s196_s8 = scalar_lea.vmem [#allocation5], %s416_s25 }
  0x26   : > { %622 = dma.done.wait (%p718_p8), %s193_s6, 128  }
  0x27   : > { %624 = vsyncadd (%p718_p8), %s193_s6, 4294967168  ;;  %v223_v0 = vld [vmem:[%s196_s8] sm:$0x3]  ;;  %v417_v1 = vld [vmem:[%s196_s8 + $0x2] sm:$0x3]  ;;  %v655_v28 = vmov 0.0   ;;  %s300_s16 = scalar_lea.hbm %s818_s2, %s643_s12 }
  0x28   : > { %v226_v2 = vmax.f32 %v223_v0, %v417_v1  ;;  %v418_v3 = vld [vmem:[%s196_s8 + $0x4] sm:$0x3]  ;;  %v419_v4 = vld [vmem:[%s196_s8 + $0x6] sm:$0x3]  ;;  %v222_v15 = vld [vmem:[%s186_s7] sm:$0x3] }
  0x29   : > { %vm237_vm0 = vcmp.eq.s32.totalorder %v222_v15, 0  ;;  %vm245_vm1 = vcmp.eq.s32.totalorder %v222_v15, 1  ;;  %vm253_vm2 = vcmp.eq.s32.totalorder %v222_v15, 2  ;;  %vm261_vm3 = vcmp.eq.s32.totalorder %v222_v15, 3  ;;  %s221_s18 = scalar_lea.vmem [#allocation7], %s763_s3  ;;  %s304_s26 = sshll.u32 %s300_s16, 4  ;;  %s305_s26 = int_to_ptr.hbm [resolvable:$true] %s304_s26 }
  0x2a   : > { %v229_v5 = vmax.f32 %v226_v2, %v418_v3  ;;  %v238_v18 = vsel %vm237_vm0, %v223_v0, 0.0  ;;  %v240_v29 = vsel %vm237_vm0, 0.25, %v655_v28  ;;  %vm277_vm4 = vcmp.ge.s32.totalorder %v222_v15, 0  ;;  %s302_s20 = sshll.u32 %s221_s18, 4  ;;  %s291_s19 = scalar_lea.sflag [#allocation4], %s763_s3  ;;  %s303_s20 = int_to_ptr.vmem [resolvable:$true] %s302_s20 }
  0x2b   : > { %v246_v23 = vsel %vm245_vm1, %v417_v1, %v238_v18  ;;  %v248_v32 = vsel %vm245_vm1, 0.25, %v240_v29  ;;  %vm278_vm5 = vcmp.lt.s32.totalorder %v222_v15, 4  ;;  %vm281_vm7 = vcmask 1041408   ;;  %s579_s27 = sshra.s32 %s305_s26, 4  ;;  %s585_s12 = scalar_lea.hbm %s818_s2, 2  ;;  %s580_s27 = int_to_ptr.hbm [resolvable:$true] %s579_s27 }
  0x2c   : > { %v232_v6 = vmax.f32 %v229_v5, %v419_v4  ;;  %v254_v27 = vsel %vm253_vm2, %v418_v3, %v246_v23  ;;  %v256_v36 = vsel %vm253_vm2, 0.25, %v248_v32  ;;  %vm279_vm6 = vmand %vm277_vm4, %vm278_vm5  ;;  %s581_s28 = scalar_lea.hbm %s580_s27, 1  ;;  %p586_p7 = scmp.lt.s32.totalorder %s580_s27, %s818_s2 }
  0x2d   : > { %v262_v31 = vsel %vm261_vm3, %v419_v4, %v254_v27  ;;  %v264_v40 = vsel %vm261_vm3, 0.25, %v256_v36  ;;  %p582_p4 = scmp.ne.s32.totalorder %s580_s27, %s581_s28  ;;  %p587_p8 = scmp.lt.s32.totalorder %s585_s12, %s581_s28 }
  0x2e   : > { %v233_v7 = vsub.f32 %v223_v0, %v232_v6  ;;  %v241_v8 = vsub.f32 %v417_v1, %v232_v6  ;;  %v249_v9 = vsub.f32 %v418_v3, %v232_v6  ;;  %v257_v10 = vsub.f32 %v419_v4, %v232_v6 }
  0x2f   : > { %v265_v34 = vsub.f32 %v262_v31, %v232_v6  ;;  %p583_p5 = pnand %p582_p4, %p722_p9  ;;  %p588_p10 = por %p587_p8, %p586_p7 }
  0x30   : > { %v234_v11 = vmul.f32 1.442695, %v233_v7  ;;  %v242_v12 = vmul.f32 1.442695, %v241_v8  ;;  %v250_v13 = vmul.f32 1.442695, %v249_v9 }
  0x31   : > { %v258_v14 = vmul.f32 1.442695, %v257_v10  ;;  %p584_p6 = pneg %p583_p5 }
  0x32   : > { %493 = vpow2.f32 %v234_v11 }
  0x33   : > { %495 = vpow2.f32 %v242_v12  ;;  %p589_p13 = pnand %p588_p10, %p584_p6 }
  0x34   : > { %497 = vpow2.f32 %v250_v13 }
  0x35   : > { %499 = vpow2.f32 %v258_v14 }
  0x38   : > { %v494_v16 = vpop.eup %493 }
  0x39   : > { %v496_v17 = vpop.eup %495  ;;  %v239_v22 = vsel %vm237_vm0, %v494_v16, 0.0 }
  0x3a   : > { %v498_v19 = vpop.eup %497  ;;  %v244_v20 = vadd.f32 %v496_v17, %v494_v16  ;;  %v247_v26 = vsel %vm245_vm1, %v496_v17, %v239_v22 }
  0x3b   : > { %v500_v21 = vpop.eup %499  ;;  %v255_v30 = vsel %vm253_vm2, %v498_v19, %v247_v26 }
  0x3c   : > { %v252_v24 = vadd.f32 %v498_v19, %v244_v20  ;;  %v263_v33 = vsel %vm261_vm3, %v500_v21, %v255_v30 }
  0x3e   : > { %v260_v25 = vadd.f32 %v500_v21, %v252_v24 }
  0x40   : > { %501 = vlog2.f32 %v260_v25 }
  0x41   : > { %503 = vrcp.f32 %v260_v25 }
  0x46   : > { %v502_v35 = vpop.eup %501 }
  0x47   : > { %v504_v37 = vpop.eup %503  ;;  %v267_v38 = vmul.f32 0.6931472, %v502_v35 }
  0x48   : > { %v270_v39 = vmul.f32 %v504_v37, %v263_v33 }
  0x49   : > { %v268_v41 = vsub.f32 %v265_v34, %v267_v38 }
  0x4a   : > { %v272_v42 = vsub.f32 1.0, %v270_v39 }
  0x4b   : > { %v271_v43 = vmul.f32 %v268_v41, %v264_v40 }
  0x4c   : > { %v273_v44 = vmax.f32 %v272_v42, 0.0 }
  0x4e   : > { %v274_v45 = vmul.f32 %v273_v44, %v273_v44 }
  0x50   : > { %v275_v46 = vmul.f32 %v274_v45, %v271_v43 }
  0x52   : > { %v276_v47 = vsub.f32 0.0, %v275_v46 }
  0x54   : > { %v280_v48 = vsel %vm279_vm6, %v276_v47, 0.0 }
  0x55   : > { %v282_v49 = vsel %vm281_vm7, %v280_v48, 0.0 }
  0x56   : > { %v283_v50 = vrot.slane %v282_v49, 4 }
  0x58   : > { %v284_v51 = vadd.f32 %v283_v50, %v282_v49 }
  0x5a   : > { %v285_v52 = vrot.slane %v284_v51, 2 }
  0x5c   : > { %v286_v53 = vadd.f32 %v285_v52, %v284_v51 }
  0x5e   : > { %v287_v54 = vrot.slane %v286_v53, 1 }
  0x60   : > { %v288_v55 = vadd.f32 %v287_v54, %v286_v53 }
  0x62   : > { %289 = vst [vmem:[%s221_s18] sm:$0x1] %v288_v55 }
  0x63   : > { %592 = shalt.err (!%p589_p13)
}
  0x64   : > { %427 = dma.vmem_to_hbm [thread:$0]  (%p722_p9), %s303_s20, 16, %s305_s26, %s291_s19  }
  0x65 PF: > { %s316_s3 = sand.u32 1, %s631_s9   ;;  %p437_p0 = pnand %p408_p12, %p729_p11 }
  0x66   : > { %s317_s7 = scalar_lea.sflag [#allocation4], %s316_s3 }
  0x67   : > { %p438_p1 = pneg %p437_p0 }
  0x69   : > { %626 = dma.done.wait (%p438_p1), %s317_s7, 16  }
  0x6a   : > { %628 = vsyncadd (%p438_p1), %s317_s7, 4294967280  ;;  %s21_s14 = sadd.s32 1, %s651_s14   ;;  %s824_s9 = smov %s635_s10 }
  0x6b   : > { %p18_p2 = scmp.ge.s32.totalorder %s21_s14, 4   ;;  %s825_s10 = smov %s639_s11 }
  0x6c   : > { %s826_s11 = smov %s727_s23  ;;  %s827_s12 = smov %s647_s13 }
  0x6d   : > { %s828_s13 = smov %s830_s17  ;;  %20 = sbr.rel (!%p18_p2) target bundleno = 8 (0x8), region = 89 }
  0x72   :  { %322 = vsyncpa [#allocation3], 1 }
  0x73   :  { %324 = vsyncpa [#allocation3 + $0x1], 1 }
  0x74   :  { %325 = vsyncpa [#allocation6], 1 }
  0x75   :  { %327 = vsyncpa [#allocation6 + $0x1], 1 }
  0x76   :  { %328 = vsyncpa [#allocation4], 1 }
  0x77   :  { %330 = vsyncpa [#allocation4 + $0x1], 1 }

</bundles_post_ra>
